<compile_context>
chip_gen: v7x
topology: tpu7x:2x2x1
jax: 0.10.0
libtpu: 0.0.40
codegen_flags: <defaults>
</compile_context>

<pallas_src>
import functools

import jax
import jax.numpy as jnp
import numpy as np
from jax.experimental import pallas as pl
from jax.experimental.pallas import tpu as pltpu


# -----------------------------------------------------------------------------
# Single-step kernel: exact RNNCell.forward.
# The [I+H, H] weight is pre-split ONCE at parameter-setup time, so
# cat((x, h), 1) @ W  ==  x @ W_x + h @ W_h  (same contraction, split in two).
# -----------------------------------------------------------------------------
def _rnn_cell_kernel(x_ref, h_ref, wx_ref, wh_ref, b_ref, out_ref):
    acc = jnp.dot(x_ref[...], wx_ref[...], preferred_element_type=jnp.float32)
    acc = acc + jnp.dot(h_ref[...], wh_ref[...],
                        preferred_element_type=jnp.float32)
    out_ref[...] = jnp.tanh(acc + b_ref[...]).astype(out_ref.dtype)


def rnn_cell_forward(x, state_old, w_x, w_h, bias, *, mxu_dtype=jnp.float32):
    """PyTorch RNNCell.forward: tanh(cat((x, state_old), 1) @ W + b).

    mxu_dtype: dtype of the matmul operands.  bf16 is the fast MXU path on
    EVERY TPU generation (v5e's MXU is bf16-native as well); the f32 default
    here is only so the demo matches the module's f32 numerics bit-closely.
    Accumulation, bias add and tanh are always f32.
    """
    B, I = x.shape
    H = state_old.shape[1]
    assert w_x.shape == (I, H) and w_h.shape == (H, H) and bias.shape == (1, H)
    # Whole arrays in VMEM (tiny per-step working set); no grid needed.
    return pl.pallas_call(
        _rnn_cell_kernel,
        out_shape=jax.ShapeDtypeStruct((B, H), jnp.float32),
    )(x.astype(mxu_dtype), state_old.astype(mxu_dtype),
      w_x.astype(mxu_dtype), w_h.astype(mxu_dtype), bias.astype(jnp.float32))


# -----------------------------------------------------------------------------
# Fused sequence kernel: one grid step = TT timesteps.
# -----------------------------------------------------------------------------
def _rnn_seq_kernel(xp_ref, h0_ref, wh_ref, out_ref, h_scratch, *,
                    mxu_dtype, tt):
    t_blk = pl.program_id(1)

    @pl.when(t_blk == 0)
    def _():
        h_scratch[...] = h0_ref[...]

    wh = wh_ref[...]                  # resident [H, H], mxu_dtype
    h_f32 = h_scratch[...]            # authoritative f32 carry
    h_mxu = h_f32.astype(mxu_dtype)

    def step(i, carry):
        h_f32, h_mxu = carry
        # x @ W_x + bias was hoisted out of the recurrence (precomputed as one
        # large batched matmul); only h @ W_h + add + tanh is serialized here.
        acc = xp_ref[i] + jnp.dot(h_mxu, wh,
                                  preferred_element_type=jnp.float32)
        h_new = jnp.tanh(acc)                         # f32 VPU/EUP path
        out_ref[i] = h_new.astype(out_ref.dtype)
        # Produce next step's MXU LHS right after tanh so the cast overlaps
        # with the output store instead of delaying the next matmul.
        return h_new, h_new.astype(mxu_dtype)

    h_f32, _ = jax.lax.fori_loop(0, tt, step, (h_f32, h_mxu), unroll=True)
    h_scratch[...] = h_f32            # carry across grid (time-block) steps


def _largest_divisor_leq(n, cap):
    cap = max(1, min(n, cap))
    for d in range(cap, 0, -1):
        if n % d == 0:
            return d
    return 1


def rnn_sequence_forward(x_seq, state0, w_x, w_h, bias, *,
                         mxu_dtype=jnp.bfloat16,
                         out_dtype=jnp.float32,
                         time_block=16,
                         core_split=1,
                         resident_single_buffer=False):
    """Fused RNN over T timesteps.

    Args:
      x_seq:  [T, B, I];  state0: [B, H];  w_x: [I, H];  w_h: [H, H];
      bias: [1, H]  (w_x / w_h are the pre-split rows of the [I+H, H] weight).
      mxu_dtype: matmul-operand dtype (bf16 default — fast on v5e/v6e/v7x).
      out_dtype: dtype of the emitted states (bf16 halves writeback bytes).
      time_block: timesteps per grid step (8-32 amortises pipeline overhead).
      core_split: split the batch across this many TensorCores (v7x: 2) via a
        leading "parallel" grid axis; each core carries its own (B/split, H)
        hidden-state scratch.  Requires (B // core_split) % 8 == 0.
      resident_single_buffer: single-buffer the fetched-once blocks (W_h, h0)
        with pl.Buffered(1) to halve their VMEM footprint (VMEM-tight configs).

    Returns:
      states: [T, B, H], states[t] = tanh(cat(x[t], h_{t-1}) @ W + b).
    """
    T, B, I = x_seq.shape
    H = state0.shape[1]
    assert w_x.shape == (I, H) and w_h.shape == (H, H) and bias.shape == (1, H)
    if B % core_split != 0:
        raise ValueError("batch must divide evenly across cores")
    Bc = B // core_split
    if core_split > 1 and Bc % 8 != 0:
        raise ValueError("per-core batch tile must be a multiple of 8 sublanes")

    tt = _largest_divisor_leq(T, time_block)
    n_tblk = T // tt

    # Hoisted input projection (one big non-sequential matmul, bias folded in).
    x_proj = (jnp.einsum("tbi,ih->tbh",
                         x_seq.astype(mxu_dtype), w_x.astype(mxu_dtype),
                         preferred_element_type=jnp.float32)
              + bias.astype(jnp.float32))

    w_h = w_h.astype(mxu_dtype)
    state0 = state0.astype(jnp.float32)

    # VMEM budget (v7x: 64 MiB physical / 32 MiB default scoped): streamed
    # x_proj / out blocks are double-buffered, W_h + h0 fetched once.
    mxu_bytes = jnp.dtype(mxu_dtype).itemsize
    out_bytes = jnp.dtype(out_dtype).itemsize
    resident_bufs = 1 if resident_single_buffer else 2
    vmem_need = (2 * tt * Bc * H * (4 + out_bytes)
                 + resident_bufs * (H * H * mxu_bytes + Bc * H * 4)
                 + Bc * H * 4)
    vmem_limit = int(min(max(vmem_need * 3 // 2, 16 * 1024 * 1024),
                         64 * 1024 * 1024))

    cost = pl.CostEstimate(
        flops=2 * T * B * H * H + T * B * H,
        transcendentals=T * B * H,
        bytes_accessed=int(T * B * H * 4 + T * B * H * out_bytes
                           + H * H * mxu_bytes + B * H * 4),
    )

    def _spec(shape, index_map, *, single=False):
        if single:
            return pl.BlockSpec(shape, index_map, pipeline_mode=pl.Buffered(1))
        return pl.BlockSpec(shape, index_map)

    kernel = functools.partial(_rnn_seq_kernel, mxu_dtype=mxu_dtype, tt=tt)

    # NOTE(perf): at realistic sizes pad H to a multiple of 128 (v5e) or 256
    # (v6e/v7x) and B to a multiple of 8 (16 for bf16) so output stores are
    # lane-dense and the MXU is fully occupied; keep the per-step f32
    # accumulator (Bc x H) under ~32-64K elements (sub-tile H inside the step
    # otherwise); once resident W_h (~H^2 bytes) no longer fits v7x's 64 MiB
    # VMEM, add an inner grid axis over W_h's output columns with a ping-pong
    # h scratch.  A further v5e micro-opt is weight-stationary MXU driving via
    # pltpu.matmul_push_rhs / matmul_acc_lhs / matmul_pop (W_h is identical
    # every step).
    return pl.pallas_call(
        kernel,
        out_shape=jax.ShapeDtypeStruct((T, B, H), out_dtype),
        grid_spec=pltpu.PrefetchScalarGridSpec(
            num_scalar_prefetch=0,
            grid=(core_split, n_tblk),     # batch-split (parallel) x time (serial)
            in_specs=[
                pl.BlockSpec((tt, Bc, H), lambda c, b: (b, c, 0)),   # stream x_proj
                _spec((Bc, H), lambda c, b: (c, 0),
                      single=resident_single_buffer),                # h0 (read at t=0)
                _spec((H, H), lambda c, b: (0, 0),
                      single=resident_single_buffer),                # W_h resident
            ],
            out_specs=pl.BlockSpec((tt, Bc, H), lambda c, b: (b, c, 0)),
            scratch_shapes=[pltpu.VMEM((Bc, H), jnp.float32)],       # carried h
        ),
        compiler_params=pltpu.CompilerParams(
            dimension_semantics=("parallel", "arbitrary"),
            vmem_limit_bytes=vmem_limit,
        ),
        cost_estimate=cost,
    )(x_proj, state0, w_h)


# ----------------------------- pure-JAX references -----------------------------

def reference_cell_exact(x, h, weight, bias):
    # Exact PyTorch semantics of RNNCell.forward (f32).
    return jnp.tanh(jnp.concatenate((x, h), axis=1) @ weight + bias)


def reference_sequence_exact(x_seq, h0, weight, bias):
    def step(h, x_t):
        h_new = jnp.tanh(jnp.concatenate((x_t, h), axis=1) @ weight + bias)
        return h_new, h_new
    _, states = jax.lax.scan(step, h0, x_seq)
    return states


def reference_sequence(x_seq, h0, weight, bias, *, mxu_dtype=jnp.float32):
    # Mirrors the kernel numerics: hoisted projection (+bias) in f32 from
    # mxu_dtype operands; recurrence with mxu_dtype operands / f32 accumulate.
    I = x_seq.shape[-1]
    w_x = weight[:I].astype(mxu_dtype)
    w_h = weight[I:].astype(mxu_dtype)
    x_proj = (jnp.einsum("tbi,ih->tbh", x_seq.astype(mxu_dtype), w_x,
                         preferred_element_type=jnp.float32)
              + bias.astype(jnp.float32))

    def step(h, xp_t):
        acc = xp_t + jnp.dot(h.astype(mxu_dtype), w_h,
                             preferred_element_type=jnp.float32)
        h_new = jnp.tanh(acc)
        return h_new, h_new

    _, states = jax.lax.scan(step, h0.astype(jnp.float32), x_proj)
    return states


if __name__ == "__main__":
    batch, input_size, hidden, seq_len = 2, 4, 32, 8
    n = hidden + input_size

    key = jax.random.PRNGKey(0)
    kx, kh, kw, kx2, kh2 = jax.random.split(key, 5)

    x_seq = jax.random.normal(kx, (seq_len, batch, input_size), dtype=jnp.float32)
    state0 = jax.random.normal(kh, (batch, hidden), dtype=jnp.float32)

    # Module init per spec: variance-scaled weight [I+H, H], zero bias [1, H].
    weight = jax.random.normal(kw, (n, hidden), dtype=jnp.float32) / np.sqrt(n)
    bias = jnp.zeros((1, hidden), dtype=jnp.float32)

    # Pre-split the parameter ONCE at init time (not in the per-step hot path).
    w_x = weight[:input_size, :]
    w_h = weight[input_size:, :]

    # 1) Single-step forward == exact module semantics (f32 MXU operands).
    out1 = jax.block_until_ready(rnn_cell_forward(x_seq[0], state0, w_x, w_h, bias))
    ref1 = reference_cell_exact(x_seq[0], state0, weight, bias)
    np.testing.assert_allclose(np.asarray(out1), np.asarray(ref1),
                               rtol=1e-5, atol=1e-5)

    # 2) Fused sequence, default bf16 MXU operands, time blocked (TT=4 -> two
    #    sequential grid steps exercise the VMEM hidden-state carry).
    out2 = jax.block_until_ready(
        rnn_sequence_forward(x_seq, state0, w_x, w_h, bias, time_block=4))
    ref2 = reference_sequence(x_seq, state0, weight, bias, mxu_dtype=jnp.bfloat16)
    np.testing.assert_allclose(np.asarray(out2), np.asarray(ref2),
                               rtol=2e-3, atol=2e-3)

    # 3) f32 MXU operands: matches the numerics-matched reference tightly and
    #    the exact cat((x, h)) @ W recurrence closely.
    out3 = jax.block_until_ready(
        rnn_sequence_forward(x_seq, state0, w_x, w_h, bias,
                             mxu_dtype=jnp.float32, time_block=8))
    ref3 = reference_sequence(x_seq, state0, weight, bias, mxu_dtype=jnp.float32)
    np.testing.assert_allclose(np.asarray(out3), np.asarray(ref3),
                               rtol=1e-5, atol=1e-5)
    ref3e = reference_sequence_exact(x_seq, state0, weight, bias)
    np.testing.assert_allclose(np.asarray(out3), np.asarray(ref3e),
                               rtol=1e-4, atol=1e-4)

    # 4) Batch split across TensorCores (v7x megacore path; runs serially and
    #    stays correct on single-TC v5e/v6e).  Needs per-core batch % 8 == 0.
    batch2 = 16
    x_seq2 = jax.random.normal(kx2, (seq_len, batch2, input_size), dtype=jnp.float32)
    state02 = jax.random.normal(kh2, (batch2, hidden), dtype=jnp.float32)
    out4 = jax.block_until_ready(
        rnn_sequence_forward(x_seq2, state02, w_x, w_h, bias,
                             time_block=4, core_split=2))
    ref4 = reference_sequence(x_seq2, state02, weight, bias, mxu_dtype=jnp.bfloat16)
    np.testing.assert_allclose(np.asarray(out4), np.asarray(ref4),
                               rtol=2e-3, atol=2e-3)

    print("KERNEL_OK")
</pallas_src>

<mosaic_0001>
module attributes {stable_mosaic.version = 11 : i64} {
  func.func @_rnn_cell_kernel(%arg0: memref<2x4xf32, #tpu.memory_space<vmem>>, %arg1: memref<2x32xf32, #tpu.memory_space<vmem>>, %arg2: memref<4x32xf32, #tpu.memory_space<vmem>>, %arg3: memref<32x32xf32, #tpu.memory_space<vmem>>, %arg4: memref<1x32xf32, #tpu.memory_space<vmem>>, %arg5: memref<2x32xf32, #tpu.memory_space<vmem>>) attributes {dimension_semantics = [], scalar_prefetch = 0 : i64, scratch_operands = 0 : i64, tpu.core_type = #tpu.core_type<tc>} {
    %c0 = arith.constant 0 : index
    %c0_0 = arith.constant 0 : index
    %0 = vector.load %arg0[%c0, %c0_0] : memref<2x4xf32, #tpu.memory_space<vmem>>, vector<2x4xf32>
    %c0_1 = arith.constant 0 : index
    %c0_2 = arith.constant 0 : index
    %1 = vector.load %arg2[%c0_1, %c0_2] : memref<4x32xf32, #tpu.memory_space<vmem>>, vector<4x32xf32>
    %cst = arith.constant dense<0.000000e+00> : vector<2x32xf32>
    %2 = tpu.matmul %0, %1, %cst {dimension_numbers = #tpu.dot_dimension_numbers<[1], [0], [0], [1], [0, 0, 1, 1], [], []>} : vector<2x4xf32>, vector<4x32xf32>, vector<2x32xf32> -> vector<2x32xf32>
    %c0_3 = arith.constant 0 : index
    %c0_4 = arith.constant 0 : index
    %3 = vector.load %arg1[%c0_3, %c0_4] : memref<2x32xf32, #tpu.memory_space<vmem>>, vector<2x32xf32>
    %c0_5 = arith.constant 0 : index
    %c0_6 = arith.constant 0 : index
    %4 = vector.load %arg3[%c0_5, %c0_6] : memref<32x32xf32, #tpu.memory_space<vmem>>, vector<32x32xf32>
    %cst_7 = arith.constant dense<0.000000e+00> : vector<2x32xf32>
    %5 = tpu.matmul %3, %4, %cst_7 {dimension_numbers = #tpu.dot_dimension_numbers<[1], [0], [0], [1], [0, 0, 1, 1], [], []>} : vector<2x32xf32>, vector<32x32xf32>, vector<2x32xf32> -> vector<2x32xf32>
    %6 = arith.addf %2, %5 : vector<2x32xf32>
    %c0_8 = arith.constant 0 : index
    %c0_9 = arith.constant 0 : index
    %7 = vector.load %arg4[%c0_8, %c0_9] : memref<1x32xf32, #tpu.memory_space<vmem>>, vector<1x32xf32>
    %8 = vector.broadcast %7 : vector<1x32xf32> to vector<2x32xf32>
    %9 = arith.addf %6, %8 : vector<2x32xf32>
    %10 = math.tanh %9 : vector<2x32xf32>
    %c0_10 = arith.constant 0 : index
    %c0_11 = arith.constant 0 : index
    %11 = vector.load %arg5[%c0_10, %c0_11] : memref<2x32xf32, #tpu.memory_space<vmem>>, vector<2x32xf32>
    tpu.vector_store %arg5[%c0_10, %c0_11], %10 {strides = array<i32>} : memref<2x32xf32, #tpu.memory_space<vmem>>, vector<2x32xf32>,
    return
  }
}

</mosaic_0001>

<bundles_post_ra>
// kernel: tpu_custom_call.1
= control target key start
LH: loop header
LB: loop body
LE: loop exit
PB: predicated region body
PF: predicated region fallthrough
CT: control target
= control target key end

     0   :  { %10 = vsyncpa [#allocation3], 0  ;;  %s438_s0 = inlined_call_operand.hbm [shape: f32[2,4], index: 0, kind: input, shape index: {}]   ;;  %s439_s1 = inlined_call_operand.vmem [shape: f32[2,32], index: 1, kind: input, shape index: {}]   ;;  %s440_s2 = inlined_call_operand.vmem [shape: f32[4,32], index: 2, kind: input, shape index: {}]   ;;  %s441_s3 = inlined_call_operand.hbm [shape: f32[32,32], index: 3, kind: input, shape index: {}]   ;;  %s442_s4 = inlined_call_operand.vmem [shape: f32[1,32], index: 4, kind: input, shape index: {}]   ;;  %s443_s5 = inlined_call_operand.hbm [shape: f32[2,32], index: 5, kind: output, shape index: {}]  }
   0x1   :  { %11 = vsyncpa [#allocation6], 0 }
   0x2   :  { %12 = vsyncpa [#allocation4], 0  ;;  %s348_s18 = smov [#allocation2]   ;;  %s349_s20 = smov [#allocation5]  }
   0x3   :  { %s19_s19 = sshll.u32 %s348_s18, 4  ;;  %s32_s21 = sshll.u32 %s349_s20, 4  ;;  %s20_s19 = int_to_ptr.vmem [resolvable:$true] %s19_s19  ;;  %s386_s21 = int_to_ptr.vmem [resolvable:$true] %s32_s21 }
   0x4   :  { %s276_s24 = scalar_lea.hbm %s438_s0, 32 }
   0x5   :  { %p277_p0 = scmp.ne.s32.totalorder %s438_s0, %s276_s24  ;;  %p280_p1 = scmp.lt.u32.totalorder %s276_s24, %s438_s0 }
   0x7   :  { %p282_p2 = pnand %p280_p1, %p277_p0 }
   0x9   :  { %285 = shalt.err (!%p282_p2)
}
   0xa   :  { %s286_s29 = scalar_lea.vmem %s20_s19, 32  ;;  %p291_p4 = scmp.lt.s32.totalorder %s20_s19, %s20_s19 }
   0xb   :  { %p287_p3 = scmp.ne.s32.totalorder %s20_s19, %s286_s29  ;;  %p292_p5 = scmp.lt.s32.totalorder %s286_s29, %s286_s29 }
   0xd   :  { %p293_p6 = por %p292_p5, %p291_p4 }
   0xf   :  { %p294_p7 = pnand %p293_p6, %p287_p3 }
  0x11   :  { %297 = shalt.err (!%p294_p7)
}
  0x12   :  { %22 = dma.hbm_to_vmem [thread:$0]  %s438_s0, 32, %s20_s19, [#allocation3]  }
  0x13   :  { %s298_s9 = scalar_lea.hbm %s441_s3, 512 }
  0x14   :  { %p299_p8 = scmp.ne.s32.totalorder %s441_s3, %s298_s9  ;;  %p302_p9 = scmp.lt.u32.totalorder %s298_s9, %s441_s3 }
  0x16   :  { %p304_p10 = pnand %p302_p9, %p299_p8 }
  0x18   :  { %307 = shalt.err (!%p304_p10)
}
  0x19   :  { %s308_s14 = scalar_lea.vmem %s386_s21, 512  ;;  %p313_p12 = scmp.lt.s32.totalorder %s386_s21, %s386_s21 }
  0x1a   :  { %p309_p11 = scmp.ne.s32.totalorder %s386_s21, %s308_s14  ;;  %p314_p13 = scmp.lt.s32.totalorder %s308_s14, %s308_s14 }
  0x1c   :  { %p315_p0 = por %p314_p13, %p313_p12 }
  0x1e   :  { %p316_p1 = pnand %p315_p0, %p309_p11 }
  0x20   :  { %319 = shalt.err (!%p316_p1)
}
  0x21   :  { %s350_s0 = smov 128   ;;  %s351_s15 = smov 8  }
  0x22   :  { %38 = dma.hbm_to_vmem [thread:$0]  %s441_s3, 512, %s386_s21, [#allocation6], %s350_s0, %s350_s0, %s351_s15  }
  0x23   :  { %342 = dma.done.wait [#allocation3], 32  }
  0x24   :  { %343 = vsyncadd [#allocation3], 4294967264 }
  0x25   :  { %344 = dma.done.wait [#allocation6], 512  }
  0x26   :  { %345 = vsyncadd [#allocation6], 4294966784  ;;  %v352_v0 = vmov 0.0|0.0   ;;  %v353_v1 = vmov 0.0   ;;  %vm354_vm0 = vmmov 0   ;;  %vm132_vm1 = vcmask 1043456  }
  0x27   :  { %260 = vmatprep.subr.bf16.mxu0 %v352_v0  ;;  %255 = vmatprep.subr.mxu1 %v353_v1  ;;  %v50_v2 = vld [vmem:[#allocation5] sm:$0xff]  ;;  %v51_v3 = vld [vmem:[#allocation5 + $0x8] sm:$0xff]  ;;  %v52_v4 = vld [vmem:[#allocation5 + $0x10] sm:$0xff]  ;;  %vm128_vm2 = vcmask 31744   ;;  %vm54_vm3 = vcmask 261120   ;;  %vm215_vm4 = vcmask 254976  }
  0x28   :  { %257 = vmatprep.mubr.msk.f32.mxu1 %vm354_vm0, %v353_v1  ;;  %252 = vmatprep.mubr.msk.f32.mxu0 %vm354_vm0, %v353_v1  ;;  %v261_v5 = vpack.c.bf16 %v51_v3, %v50_v2  ;;  %v53_v6 = vld [vmem:[#allocation5 + $0x18] sm:$0xff]  ;;  %v49_v10 = vld [vmem:[%s439_s1] sm:$0x3] }
  0x29   :  { %v48_v7 = vld [vmem:[%s440_s2] sm:$0xf]  ;;  %v47_v8 = vld [vmem:[#allocation2] sm:$0x3]  ;;  %v264_v9 = vpack.c.bf16 %v53_v6, %v52_v4  ;;  %s355_s2 = smov [#allocation7]  }
  0x2a   :  { %256 = vmatpush3.msk.msra.mxu1 %vm132_vm1, %v48_v7  ;;  %262 = vmatpush3.bf16.msra.mxu0 %v261_v5  ;;  %v236_v14 = vld [vmem:[%s442_s4] ss:$0 sm:$0xff]  ;;  %s223_s23 = sshll.u32 %s355_s2, 4  ;;  %s224_s23 = int_to_ptr.vmem [resolvable:$true] %s223_s23 }
  0x2b   :  { %258 = vmatmul.mubr.msk.f32.vlgmr.msra.gmra.mrb[0].mxu1 %vm128_vm2, %v47_v8  ;;  %263 = vmatprep.subr.bf16.mxu0 %v352_v0  ;;  %s320_s1 = scalar_lea.vmem %s224_s23, 32  ;;  %p325_p3 = scmp.lt.s32.totalorder %s224_s23, %s224_s23 }
  0x2c   :  { %p321_p2 = scmp.ne.s32.totalorder %s224_s23, %s320_s1  ;;  %p326_p4 = scmp.lt.s32.totalorder %s320_s1, %s320_s1 }
  0x2e   :  { %265 = vmatpush3.bf16.msra.mxu0 %v264_v9  ;;  %p327_p5 = por %p326_p4, %p325_p3 }
  0x30   :  { %p328_p6 = pnand %p327_p5, %p321_p2 }
  0x31   :  { %253 = vmatmul.mubr.msk.f32.vlgmr.msra.gmra.mrb[0].mxu0 %vm54_vm3, %v49_v10 }
  0xfe   :  { %v202_v11 = vpop.f32.mrb[0].mxu1 }
  0xff   :  { %v259_v12 = vpop.f32.mrb[1].mxu1 }
 0x104   :  { %v124_v13 = vpop.f32.mrb[0].mxu0 }
 0x105   :  { %v203_v15 = vadd.f32 %v202_v11, %v124_v13  ;;  %v254_v16 = vpop.f32.mrb[1].mxu0 }
 0x107   :  { %v213_v17 = vadd.f32 %v236_v14, %v203_v15 }
 0x109   :  { %274 = vtanh.f32 %v213_v17 }
 0x113   :  { %v275_v18 = vpop.eup %274 }
 0x114   :  { %216 = vst.msk [vmem:[#allocation7] sm:$0x3] %vm215_vm4, %v275_v18 }
 0x115   :  { %331 = shalt.err (!%p328_p6)
}
 0x116   :  { %s332_s4 = scalar_lea.hbm %s443_s5, 32 }
 0x117   :  { %p333_p7 = scmp.ne.s32.totalorder %s443_s5, %s332_s4  ;;  %p336_p8 = scmp.lt.u32.totalorder %s332_s4, %s443_s5 }
 0x119   :  { %p338_p9 = pnand %p336_p8, %p333_p7 }
 0x11b   :  { %341 = shalt.err (!%p338_p9)
}
 0x11c   :  { %226 = dma.vmem_to_hbm [thread:$0]  %s224_s23, 32, %s443_s5, [#allocation4]  }
 0x11d   :  { %346 = dma.done.wait [#allocation4], 32  }
 0x11e   :  { %347 = vsyncadd [#allocation4], 4294967264 }
 0x11f   :  { %230 = vsyncpa [#allocation3], 1 }
 0x120   :  { %231 = vsyncpa [#allocation6], 1 }
 0x121   :  { %232 = vsyncpa [#allocation4], 1 }

</bundles_post_ra>
